<compile_context>
chip_gen: v6e
topology: v6e:2x2x1
jax: 0.10.0
libtpu: 0.0.40
codegen_flags: <defaults>
</compile_context>

<pallas_src>
import functools

import numpy as np
import jax
import jax.numpy as jnp
from jax.experimental import pallas as pl
from jax.experimental.pallas import tpu as pltpu


def _round_up(x, m):
    return ((x + m - 1) // m) * m


# ----------------------------------------------------------------------------
# Glue: degree-1 (linear) B-spline basis, densified over K = prod(kernel_size).
# b_dense[e, k] = sum_s basis[e, s] * [weight_index[e, s] == k]
# ----------------------------------------------------------------------------
def _spline_basis_linear_dense(pseudo, kernel_size, is_open_spline):
    # TODO(synk): only degree=1 (linear) B-spline basis is implemented here.
    E, D = pseudo.shape
    S = 2 ** D
    K = int(np.prod(kernel_size))

    ks = jnp.asarray(np.asarray(kernel_size), jnp.float32)
    op = jnp.asarray(np.asarray(is_open_spline), jnp.float32)
    v = pseudo.astype(jnp.float32) * (ks - op)[None, :]        # degree = 1
    v_floor = jnp.floor(v)
    frac = v - v_floor

    basis = jnp.ones((E, S), jnp.float32)
    wi = jnp.zeros((E, S), jnp.int32)
    offset = 1
    for d in range(D):
        k_mod = (np.arange(S) // (2 ** d)) % 2                 # (S,) in {0,1}
        k_mod_j = jnp.asarray(k_mod, jnp.int32)[None, :]
        idx_d = (v_floor[:, d:d + 1].astype(jnp.int32) + k_mod_j) % int(kernel_size[d])
        wi = wi + idx_d * offset
        offset *= int(kernel_size[d])
        f = frac[:, d:d + 1]
        basis = basis * jnp.where(k_mod_j == 0, 1.0 - f, f)

    one_hot = (wi[:, :, None] == jnp.arange(K, dtype=jnp.int32)[None, None, :])
    return jnp.sum(one_hot.astype(jnp.float32) * basis[:, :, None], axis=1)    # (E, K)


# ----------------------------------------------------------------------------
# Kernel 1: spline-weighted neighbor transform, tiled over edges (parallel).
#   xb[e, c*K+k] = x[e,c] * b[e,k]   (channel-major when Cin <= K: min(Cin,K)
#                                     wide stores instead of K narrow ones)
#   out = xb @ W'                    (single deep MXU matmul; W' resident)
#   x_ref : (TILE_E, Cin)  gathered source-node features (sorted edge order)
#   b_ref : (TILE_E, K)    lane-dense basis coefficients
#   w_ref : (KC, CP)       reordered spline weight, zero-padded to CP lanes,
#                          column `Cout` = W' @ att2 (logit term for free)
#   o_ref : (TILE_E, CP)   lane-dense messages
#   xb_ref: (TILE_E, KC)   VMEM scratch, fully rewritten every grid step
# ----------------------------------------------------------------------------
def _spline_weight_kernel(x_ref, b_ref, w_ref, o_ref, xb_ref, *,
                          cin, num_k, channel_major):
    x = x_ref[...]                                             # (TE, Cin)
    b = b_ref[...]                                             # (TE, K)
    if channel_major:                                          # Cin stores of width K
        for c in range(cin):
            xb_ref[:, c * num_k:(c + 1) * num_k] = b * x[:, c:c + 1]
    else:                                                      # K stores of width Cin
        for k in range(num_k):
            xb_ref[:, k * cin:(k + 1) * cin] = x * b[:, k:k + 1]
    o_ref[...] = jnp.dot(xb_ref[...], w_ref[...],
                         preferred_element_type=jnp.float32)
    # TODO(synk): optional bf16 MXU operands (f32 accumulation).


# ----------------------------------------------------------------------------
# Kernel 2: attention-weighted scatter-add as a one-hot matmul on the MXU.
# Grid = (node_tiles [parallel], edge_tiles_per_node_tile [arbitrary]).
# Edges are sorted by target node; a scalar-prefetched block table maps
# (node_tile, j) -> edge-tile index (or a dummy all-padding tile).
#   tbl_ref  : (num_nt, max_j) int32 SMEM  (used only by the index_maps)
#   rows_ref : (1, 1, TILE_E)  int32       target node per edge (sentinel for pad)
#   alpha_ref: (1, 1, TILE_E)  f32         normalized attention weight (0 for pad)
#   msg_ref  : (TILE_E, CP)    f32         spline-transformed messages
#   o_ref    : (NODE_TILE, CP) f32         accumulated over j, revisited block
# ----------------------------------------------------------------------------
def _attn_scatter_kernel(tbl_ref, rows_ref, alpha_ref, msg_ref, o_ref, *,
                         node_tile):
    nt = pl.program_id(0)
    j = pl.program_id(1)

    @pl.when(j == 0)
    def _init():
        o_ref[...] = jnp.zeros_like(o_ref)

    rows = rows_ref[0]                                     # (1, TE) int32
    alpha = alpha_ref[0]                                   # (1, TE) f32
    te = rows.shape[-1]
    node_ids = (jax.lax.broadcasted_iota(jnp.int32, (node_tile, te), 0)
                + nt * node_tile)                          # (NT, TE)
    sel = jnp.where(rows == node_ids, alpha, 0.0)          # alpha-scaled one-hot
    o_ref[...] += jnp.dot(sel, msg_ref[...],
                          preferred_element_type=jnp.float32)


# ----------------------------------------------------------------------------
# Wrapper (AttSplineConv.forward, eval mode)
# ----------------------------------------------------------------------------
def att_spline_conv_forward(x, edge_index, pseudo, weight, root_weight, att_weight,
                            kernel_size, is_open_spline, degree=1,
                            negative_slope=0.2, dropout=0.0, bias=None,
                            tile_e=2048, node_tile=512):
    assert degree == 1
    # TODO(synk): attention dropout is stochastic and training-only
    # (dropout = self.dropout if self.training else 0); eval-mode forward only.
    N, Cin = x.shape
    E = edge_index.shape[1]
    K = weight.shape[0]
    Cout = weight.shape[2]

    row = edge_index[0].astype(jnp.int32)
    col = edge_index[1].astype(jnp.int32)

    x = x.astype(jnp.float32)
    weight = weight.astype(jnp.float32)
    root_weight = root_weight.astype(jnp.float32)
    att_weight = att_weight.astype(jnp.float32)
    bias_vec = (bias if bias is not None else jnp.zeros((Cout,), jnp.float32))
    bias_vec = bias_vec.astype(jnp.float32)

    # ---- padded / aligned sizes --------------------------------------------
    cp = _round_up(Cout, 128)                    # lane-dense channel padding
    kc = K * Cin                                 # fused contraction depth (unpadded)
    tile_e = _round_up(max(8, min(int(tile_e), _round_up(E, 8))), 8)
    num_real_tiles = (E + tile_e - 1) // tile_e
    num_et = num_real_tiles + 1                  # + one dedicated all-padding tile
    e_pad = num_et * tile_e
    node_tile = _round_up(max(8, min(int(node_tile), _round_up(N, 8))), 8)
    n_pad = _round_up(N, node_tile)
    num_nt = n_pad // node_tile

    # ---- glue: sort edges by target node so each node's edges are contiguous
    perm = jnp.argsort(row)
    row_s = row[perm]
    col_s = col[perm]
    pseudo_s = pseudo[perm]

    b_dense = _spline_basis_linear_dense(pseudo_s, kernel_size, is_open_spline)  # (E, K)
    x_col = x[col_s]                                                             # (E, Cin)
    # TODO(synk): fuse the x[col] gather into kernel 1 via per-row DMA.

    pad_e = e_pad - E
    x_col_p = jnp.pad(x_col, ((0, pad_e), (0, 0)))
    b_p = jnp.pad(b_dense, ((0, pad_e), (0, 0)))

    # Spline weight, reordered for the xb layout, padded lane-dense; the extra
    # column at index Cout carries W' @ att2 -> kernel 1 emits the message part
    # of the attention logit without extra work.
    channel_major = Cin <= K
    if channel_major:
        w2 = jnp.transpose(weight, (1, 0, 2)).reshape(kc, Cout)   # [c*K + k, o]
    else:
        w2 = weight.reshape(kc, Cout)                             # [k*Cin + c, o]
    att1 = att_weight[:Cout]
    att2 = att_weight[Cout:]
    w2_p = jnp.pad(w2, ((0, 0), (0, cp - Cout)))                  # (KC, CP)
    logit_in_kernel = cp > Cout
    if logit_in_kernel:
        w2_p = w2_p.at[:, Cout].set(w2 @ att2)

    # ---- kernel 1: spline-weighted neighbor transform (edge-tile grid) ------
    out_edges = pl.pallas_call(
        functools.partial(_spline_weight_kernel, cin=Cin, num_k=K,
                          channel_major=channel_major),
        out_shape=jax.ShapeDtypeStruct((e_pad, cp), jnp.float32),
        grid=(num_et,),
        in_specs=[
            pl.BlockSpec((tile_e, Cin), lambda e: (e, 0)),
            pl.BlockSpec((tile_e, K), lambda e: (e, 0)),
            pl.BlockSpec((kc, cp), lambda e: (0, 0)),             # resident weight
        ],
        out_specs=pl.BlockSpec((tile_e, cp), lambda e: (e, 0)),
        scratch_shapes=[pltpu.VMEM((tile_e, kc), jnp.float32)],
        compiler_params=pltpu.CompilerParams(
            dimension_semantics=("parallel",),
            vmem_limit_bytes=48 * 1024 * 1024),
    )(x_col_p, b_p, w2_p)                                         # (E_pad, CP)

    # ---- glue: root transform + leaky-relu + segment softmax (O(E) scalars) --
    root = jnp.dot(x, root_weight)                                # (N, Cout)
    s_root = jnp.dot(root, att1)                                  # (N,)
    if logit_in_kernel:
        msg_logit = out_edges[:E, Cout]
    else:
        msg_logit = jnp.dot(out_edges[:E, :Cout], att2)
    logit = s_root[row_s] + msg_logit
    logit = jnp.where(logit >= 0.0, logit, negative_slope * logit)
    seg_max = jax.ops.segment_max(logit, row_s, num_segments=N)
    alpha = jnp.exp(logit - seg_max[row_s])
    denom = jax.ops.segment_sum(alpha, row_s, num_segments=N)
    alpha = alpha / (denom[row_s] + 1e-16)                        # (E,)

    # ---- per-node-tile edge-block table (scalar prefetch for kernel 2) ------
    dummy_blk = num_et - 1                                        # all-padding tile
    boundaries = jnp.arange(num_nt + 1, dtype=jnp.int32) * node_tile
    bounds = jnp.searchsorted(row_s, boundaries)                  # (num_nt+1,)
    lo, hi = bounds[:-1], bounds[1:]                              # edges [lo, hi)
    has_edges = hi > lo
    first_blk = lo // tile_e
    counts = jnp.where(has_edges, (hi - 1) // tile_e - first_blk + 1, 0)
    # NOTE: data-dependent grid extent; evaluated eagerly (glue is not jitted).
    # TODO(synk): under jit use the static bound max_j = num_real_tiles.
    max_j = max(int(jnp.max(counts)), 1)
    j_ids = jnp.arange(max_j, dtype=jnp.int32)
    blk_tbl = jnp.where(j_ids[None, :] < counts[:, None],
                        first_blk[:, None] + j_ids[None, :],
                        dummy_blk).astype(jnp.int32)              # (num_nt, max_j)

    rows3d = jnp.concatenate(
        [row_s, jnp.full((pad_e,), n_pad, jnp.int32)]).reshape(num_et, 1, tile_e)
    alpha3d = jnp.concatenate(
        [alpha, jnp.zeros((pad_e,), jnp.float32)]).reshape(num_et, 1, tile_e)

    # ---- kernel 2: attention-weighted scatter-add (one-hot matmul, node-tiled)
    grid_spec = pltpu.PrefetchScalarGridSpec(
        num_scalar_prefetch=1,                                    # blk_tbl -> SMEM
        grid=(num_nt, max_j),
        in_specs=[
            pl.BlockSpec((1, 1, tile_e), lambda nt, j, tbl: (tbl[nt, j], 0, 0)),
            pl.BlockSpec((1, 1, tile_e), lambda nt, j, tbl: (tbl[nt, j], 0, 0)),
            pl.BlockSpec((tile_e, cp), lambda nt, j, tbl: (tbl[nt, j], 0)),
        ],
        out_specs=pl.BlockSpec((node_tile, cp), lambda nt, j, tbl: (nt, 0)),
    )
    agg = pl.pallas_call(
        functools.partial(_attn_scatter_kernel, node_tile=node_tile),
        out_shape=jax.ShapeDtypeStruct((n_pad, cp), jnp.float32),
        grid_spec=grid_spec,
        compiler_params=pltpu.CompilerParams(
            dimension_semantics=("parallel", "arbitrary"),
            vmem_limit_bytes=48 * 1024 * 1024),
    )(blk_tbl, rows3d, alpha3d, out_edges)                        # (N_pad, CP)

    # root transform and bias are added in glue (keeps kernel 2 VMEM small).
    return agg[:N, :Cout] + root + bias_vec[None, :]


# ----------------------------------------------------------------------------
# Pure-JAX reference (same math, no Pallas) for a correctness check.
# ----------------------------------------------------------------------------
def att_spline_conv_reference(x, edge_index, pseudo, weight, root_weight, att_weight,
                              kernel_size, is_open_spline, negative_slope, bias):
    row = edge_index[0].astype(jnp.int32)
    col = edge_index[1].astype(jnp.int32)
    N = x.shape[0]
    Cout = weight.shape[2]
    b_dense = _spline_basis_linear_dense(pseudo, kernel_size, is_open_spline)
    out = jnp.einsum('ek,ei,kio->eo', b_dense, x[col], weight)
    root = x @ root_weight
    alpha = (root[row] * att_weight[:Cout]).sum(-1) + (out * att_weight[Cout:]).sum(-1)
    alpha = jnp.where(alpha >= 0, alpha, negative_slope * alpha)
    seg_max = jax.ops.segment_max(alpha, row, num_segments=N)
    alpha = jnp.exp(alpha - seg_max[row])
    denom = jax.ops.segment_sum(alpha, row, num_segments=N)
    alpha = alpha / (denom[row] + 1e-16)
    agg = jax.ops.segment_sum(alpha[:, None] * out, row, num_segments=N)
    return agg + root + bias[None, :]


if __name__ == "__main__":
    # Small deterministic problem; tile_e / node_tile chosen so that padding,
    # the dummy edge tile and multiple node tiles are all exercised.
    N, E = 16, 50          # nodes, edges
    Cin, Cout = 8, 16      # in/out channels
    dim = 2                # pseudo-coordinate dimensionality
    kernel_size = np.array([5, 5], dtype=np.int64)
    is_open_spline = np.array([1, 1], dtype=np.int64)
    K = int(np.prod(kernel_size))                        # 25 spline weights
    negative_slope = 0.2

    key = jax.random.PRNGKey(0)
    k_x, k_ps, k_row, k_col, k_w, k_rw, k_aw, k_b = jax.random.split(key, 8)

    x = jax.random.normal(k_x, (N, Cin), jnp.float32)
    pseudo = jax.random.uniform(k_ps, (E, dim), jnp.float32)
    row = jax.random.randint(k_row, (E,), 0, N, jnp.int32)
    col = jax.random.randint(k_col, (E,), 0, N, jnp.int32)
    edge_index = jnp.stack([row, col], axis=0)

    # reset_parameters(): uniform(-1/sqrt(size), 1/sqrt(size)), size = Cin * K
    bound = 1.0 / np.sqrt(Cin * K)
    weight = jax.random.uniform(k_w, (K, Cin, Cout), jnp.float32, -bound, bound)
    root_weight = jax.random.uniform(k_rw, (Cin, Cout), jnp.float32, -bound, bound)
    att_weight = jax.random.uniform(k_aw, (2 * Cout,), jnp.float32, -bound, bound)
    bias = jax.random.uniform(k_b, (Cout,), jnp.float32, -bound, bound)

    out = att_spline_conv_forward(x, edge_index, pseudo, weight, root_weight,
                                  att_weight, kernel_size, is_open_spline,
                                  degree=1, negative_slope=negative_slope,
                                  dropout=0.0, bias=bias, tile_e=16, node_tile=8)
    out = jax.block_until_ready(out)

    ref = att_spline_conv_reference(x, edge_index, pseudo, weight, root_weight,
                                    att_weight, kernel_size, is_open_spline,
                                    negative_slope, bias)
    assert out.shape == (N, Cout)
    assert bool(jnp.allclose(out, ref, atol=1e-4, rtol=1e-4)), "mismatch vs reference"
    print("KERNEL_OK")
</pallas_src>

<mosaic_0001>
module attributes {stable_mosaic.version = 11 : i64} {
  func.func @_spline_weight_kernel(%arg0: i32, %arg1: memref<16x8xf32, #tpu.memory_space<vmem>>, %arg2: memref<16x25xf32, #tpu.memory_space<vmem>>, %arg3: memref<200x128xf32, #tpu.memory_space<vmem>>, %arg4: memref<16x128xf32, #tpu.memory_space<vmem>>, %arg5: memref<16x200xf32, #tpu.memory_space<vmem>>) attributes {dimension_semantics = [#tpu.dimension_semantics<parallel>], iteration_bounds = array<i64: 5>, scalar_prefetch = 0 : i64, scratch_operands = 1 : i64, tpu.core_type = #tpu.core_type<tc>, window_params = [{transform_indices = @transform_0, window_bounds = array<i64: 16, 8>}, {transform_indices = @transform_1, window_bounds = array<i64: 16, 25>}, {pipeline_mode = #tpu.pipeline_mode<synchronous>, transform_indices = @transform_2, window_bounds = array<i64: 200, 128>}, {transform_indices = @transform_3, window_bounds = array<i64: 16, 128>}]} {
    %c0 = arith.constant 0 : index
    %c0_0 = arith.constant 0 : index
    %0 = vector.load %arg1[%c0, %c0_0] : memref<16x8xf32, #tpu.memory_space<vmem>>, vector<16x8xf32>
    %c0_1 = arith.constant 0 : index
    %c0_2 = arith.constant 0 : index
    %1 = vector.load %arg2[%c0_1, %c0_2] : memref<16x25xf32, #tpu.memory_space<vmem>>, vector<16x25xf32>
    %2 = vector.extract_strided_slice %0 {offsets = [0, 0], sizes = [16, 1], strides = [1, 1]} : vector<16x8xf32> to vector<16x1xf32>
    %3 = vector.broadcast %2 : vector<16x1xf32> to vector<16x25xf32>
    %4 = arith.mulf %1, %3 : vector<16x25xf32>
    %c0_3 = arith.constant 0 : index
    %c0_4 = arith.constant 0 : index
    %5 = vector.load %arg5[%c0_3, %c0_4] : memref<16x200xf32, #tpu.memory_space<vmem>>, vector<16x25xf32>
    tpu.vector_store %arg5[%c0_3, %c0_4], %4 {strides = array<i32>} : memref<16x200xf32, #tpu.memory_space<vmem>>, vector<16x25xf32>,
    %6 = vector.extract_strided_slice %0 {offsets = [0, 1], sizes = [16, 1], strides = [1, 1]} : vector<16x8xf32> to vector<16x1xf32>
    %7 = vector.broadcast %6 : vector<16x1xf32> to vector<16x25xf32>
    %8 = arith.mulf %1, %7 : vector<16x25xf32>
    %c0_5 = arith.constant 0 : index
    %c25 = arith.constant 25 : index
    %9 = vector.load %arg5[%c0_5, %c25] : memref<16x200xf32, #tpu.memory_space<vmem>>, vector<16x25xf32>
    tpu.vector_store %arg5[%c0_5, %c25], %8 {strides = array<i32>} : memref<16x200xf32, #tpu.memory_space<vmem>>, vector<16x25xf32>,
    %10 = vector.extract_strided_slice %0 {offsets = [0, 2], sizes = [16, 1], strides = [1, 1]} : vector<16x8xf32> to vector<16x1xf32>
    %11 = vector.broadcast %10 : vector<16x1xf32> to vector<16x25xf32>
    %12 = arith.mulf %1, %11 : vector<16x25xf32>
    %c0_6 = arith.constant 0 : index
    %c50 = arith.constant 50 : index
    %13 = vector.load %arg5[%c0_6, %c50] : memref<16x200xf32, #tpu.memory_space<vmem>>, vector<16x25xf32>
    tpu.vector_store %arg5[%c0_6, %c50], %12 {strides = array<i32>} : memref<16x200xf32, #tpu.memory_space<vmem>>, vector<16x25xf32>,
    %14 = vector.extract_strided_slice %0 {offsets = [0, 3], sizes = [16, 1], strides = [1, 1]} : vector<16x8xf32> to vector<16x1xf32>
    %15 = vector.broadcast %14 : vector<16x1xf32> to vector<16x25xf32>
    %16 = arith.mulf %1, %15 : vector<16x25xf32>
    %c0_7 = arith.constant 0 : index
    %c75 = arith.constant 75 : index
    %17 = vector.load %arg5[%c0_7, %c75] : memref<16x200xf32, #tpu.memory_space<vmem>>, vector<16x25xf32>
    tpu.vector_store %arg5[%c0_7, %c75], %16 {strides = array<i32>} : memref<16x200xf32, #tpu.memory_space<vmem>>, vector<16x25xf32>,
    %18 = vector.extract_strided_slice %0 {offsets = [0, 4], sizes = [16, 1], strides = [1, 1]} : vector<16x8xf32> to vector<16x1xf32>
    %19 = vector.broadcast %18 : vector<16x1xf32> to vector<16x25xf32>
    %20 = arith.mulf %1, %19 : vector<16x25xf32>
    %c0_8 = arith.constant 0 : index
    %c100 = arith.constant 100 : index
    %21 = vector.load %arg5[%c0_8, %c100] : memref<16x200xf32, #tpu.memory_space<vmem>>, vector<16x25xf32>
    tpu.vector_store %arg5[%c0_8, %c100], %20 {strides = array<i32>} : memref<16x200xf32, #tpu.memory_space<vmem>>, vector<16x25xf32>,
    %22 = vector.extract_strided_slice %0 {offsets = [0, 5], sizes = [16, 1], strides = [1, 1]} : vector<16x8xf32> to vector<16x1xf32>
    %23 = vector.broadcast %22 : vector<16x1xf32> to vector<16x25xf32>
    %24 = arith.mulf %1, %23 : vector<16x25xf32>
    %c0_9 = arith.constant 0 : index
    %c125 = arith.constant 125 : index
    %25 = vector.load %arg5[%c0_9, %c125] : memref<16x200xf32, #tpu.memory_space<vmem>>, vector<16x25xf32>
    tpu.vector_store %arg5[%c0_9, %c125], %24 {strides = array<i32>} : memref<16x200xf32, #tpu.memory_space<vmem>>, vector<16x25xf32>,
    %26 = vector.extract_strided_slice %0 {offsets = [0, 6], sizes = [16, 1], strides = [1, 1]} : vector<16x8xf32> to vector<16x1xf32>
    %27 = vector.broadcast %26 : vector<16x1xf32> to vector<16x25xf32>
    %28 = arith.mulf %1, %27 : vector<16x25xf32>
    %c0_10 = arith.constant 0 : index
    %c150 = arith.constant 150 : index
    %29 = vector.load %arg5[%c0_10, %c150] : memref<16x200xf32, #tpu.memory_space<vmem>>, vector<16x25xf32>
    tpu.vector_store %arg5[%c0_10, %c150], %28 {strides = array<i32>} : memref<16x200xf32, #tpu.memory_space<vmem>>, vector<16x25xf32>,
    %30 = vector.extract_strided_slice %0 {offsets = [0, 7], sizes = [16, 1], strides = [1, 1]} : vector<16x8xf32> to vector<16x1xf32>
    %31 = vector.broadcast %30 : vector<16x1xf32> to vector<16x25xf32>
    %32 = arith.mulf %1, %31 : vector<16x25xf32>
    %c0_11 = arith.constant 0 : index
    %c175 = arith.constant 175 : index
    %33 = vector.load %arg5[%c0_11, %c175] : memref<16x200xf32, #tpu.memory_space<vmem>>, vector<16x25xf32>
    tpu.vector_store %arg5[%c0_11, %c175], %32 {strides = array<i32>} : memref<16x200xf32, #tpu.memory_space<vmem>>, vector<16x25xf32>,
    %c0_12 = arith.constant 0 : index
    %c0_13 = arith.constant 0 : index
    %34 = vector.load %arg5[%c0_12, %c0_13] : memref<16x200xf32, #tpu.memory_space<vmem>>, vector<16x200xf32>
    %c0_14 = arith.constant 0 : index
    %c0_15 = arith.constant 0 : index
    %35 = vector.load %arg3[%c0_14, %c0_15] : memref<200x128xf32, #tpu.memory_space<vmem>>, vector<200x128xf32>
    %cst = arith.constant dense<0.000000e+00> : vector<16x128xf32>
    %36 = tpu.matmul %34, %35, %cst {dimension_numbers = #tpu.dot_dimension_numbers<[1], [0], [0], [1], [0, 0, 1, 1], [], []>} : vector<16x200xf32>, vector<200x128xf32>, vector<16x128xf32> -> vector<16x128xf32>
    %c0_16 = arith.constant 0 : index
    %c0_17 = arith.constant 0 : index
    %37 = vector.load %arg4[%c0_16, %c0_17] : memref<16x128xf32, #tpu.memory_space<vmem>>, vector<16x128xf32>
    tpu.vector_store %arg4[%c0_16, %c0_17], %36 {strides = array<i32>} : memref<16x128xf32, #tpu.memory_space<vmem>>, vector<16x128xf32>,
    return
  }
  func.func @transform_0(%arg0: i32) -> (i32, i32) {
    %c0_i32 = arith.constant 0 : i32
    %c0_i32_0 = arith.constant 0 : i32
    return %arg0, %c0_i32 : i32, i32
  }
  func.func @transform_1(%arg0: i32) -> (i32, i32) {
    %c0_i32 = arith.constant 0 : i32
    %c0_i32_0 = arith.constant 0 : i32
    return %arg0, %c0_i32 : i32, i32
  }
  func.func @transform_2(%arg0: i32) -> (i32, i32) {
    %c0_i32 = arith.constant 0 : i32
    %c0_i32_0 = arith.constant 0 : i32
    %c0_i32_1 = arith.constant 0 : i32
    return %c0_i32, %c0_i32_0 : i32, i32
  }
  func.func @transform_3(%arg0: i32) -> (i32, i32) {
    %c0_i32 = arith.constant 0 : i32
    %c0_i32_0 = arith.constant 0 : i32
    return %arg0, %c0_i32 : i32, i32
  }
}

</mosaic_0001>

<bundles_post_ra>
// kernel: tpu_custom_call.1
= control target key start
LH: loop header
LB: loop body
LE: loop exit
PB: predicated region body
PF: predicated region fallthrough
CT: control target
= control target key end

     0   :  { %8 = vsyncpa [#allocation4], 0  ;;  %s1057_s0 = inlined_call_operand.vmem [shape: f32[80,8], index: 0, kind: input, shape index: {}]   ;;  %s1058_s1 = inlined_call_operand.vmem [shape: f32[80,25], index: 1, kind: input, shape index: {}]   ;;  %s1059_s2 = inlined_call_operand.vmem [shape: f32[200,128], index: 2, kind: input, shape index: {}]   ;;  %s1060_s3 = inlined_call_operand.hbm [shape: f32[80,128], index: 3, kind: output, shape index: {}]  }
   0x1   :  { %10 = vsyncpa [#allocation4 + $0x1], 0  ;;  %s801_s12 = smov 0   ;;  %s803_s13 = smov 0  }
   0x2   :  { %s805_s14 = smov 0   ;;  %s807_s15 = smov 0  }
   0x3 LB: > { %s822_s16 = sadd.s32 4294967295, %s760_s15   ;;  %s564_s17 = sadd.s32 4294967294, %s760_s15   ;;  %s760_s15 = sphi %s807_s15, %s1066_s15   ;;  %s756_s14 = sphi %s805_s14, %s1065_s14   ;;  %s752_s13 = sphi %s803_s13, %s1064_s13   ;;  %s748_s12 = sphi %s801_s12, %s1063_s12  }
   0x4   : > { %s826_s18 = sadd.s32 1, %s760_s15   ;;  %s96_s19 = sadd.s32 1, %s756_s14 }
   0x5   : > { %s93_s20 = ssub.s32 %s760_s15, %s826_s18  ;;  %p106_p0 = scmp.ne.s32.totalorder %s756_s14, %s752_s13 }
   0x6   : > { %p94_p1 = scmp.eq.s32.totalorder %s93_s20, 0  ;;  %p107_p2 = scmp.eq.s32.totalorder %s822_s16, 4 }
   0x7   : > { %p112_p3 = scmp.ne.s32.totalorder %s752_s13, %s748_s12  ;;  %p113_p4 = scmp.eq.s32.totalorder %s564_s17, 4 }
   0x8   : > { %s837_s21 = scalar_select %p94_p1, %s756_s14, %s96_s19  }
   0x9   : > { %p839_p5 = por %p107_p2, %p106_p0  ;;  %p843_p6 = por %p113_p4, %p112_p3 }
   0xa   : > { %p567_p7 = scmp.ge.s32.totalorder %s760_s15, 1  ;;  %p152_p8 = scmp.lt.s32.totalorder %s760_s15, 6 }
   0xc   : > { %p153_p9 = pnand %p567_p7, %p152_p8 }
   0xd   : > { %s569_s24 = sshll.u32 (!%p153_p9), %s822_s16, 1  ;;  %s771_s9 = smov (!%p153_p9), 25  }
   0xe   : > { %156 = sbr.rel (%p153_p9) target bundleno = 514 (0x202), region = 32  ;;  %p182_p10 = scmp.lt.s32.totalorder (!%p153_p9), %s569_s24, 9 }
   0xf   : > { %s772_s27 = smov (!%p153_p9), 50   ;;  %s773_s5 = smov (!%p153_p9), 125  }
  0x10   : > { %s775_s19 = smov (!%p153_p9), 22   ;;  %s777_s7 = smov (!%p153_p9), 47  }
  0x11   : > { %s178_s8 = sand.u32 (!%p153_p9), 1, %s752_s13   ;;  %s580_s17 = sshll.u32 (!%p153_p9), %s822_s16, 8 }
  0x12   : > { %s1015_s26 = scalar_lea.hbm (!%p153_p9), %s1060_s3, %s580_s17  ;;  %s778_s16 = smov (!%p153_p9), [#allocation3]  }
  0x13   : > { %v762_v0 = vmov 2   ;;  %v763_v1 = vmov 1   ;;  %s1068_s24 = smov (!%p182_p10, %s569_s24), 9  ;;  %v764_v4 = vmov 5   ;;  %v765_v5 = vmov 3   ;;  %v382_v9 = vld [vmem:[%s1059_s2 + $0x78] sm:$0xff] }
  0x14   : > { %689 = vset.pattern.permute.xlu1 %v762_v0  ;;  %688 = vset.pattern.permute.xlu0 %v763_v1  ;;  %s570_s25 = sshll.u32 %s1068_s24, 3  ;;  %v766_v6 = vmov 6   ;;  %v767_v7 = vmov 4   ;;  %v768_v8 = vmov 7   ;;  %v769_v10 = vmov 0.0   ;;  %v381_v11 = vld [vmem:[%s1059_s2 + $0x70] sm:$0xff] }
  0x15   : > { %s185_s28 = scalar_lea.vmem %s1057_s0, %s570_s25  ;;  %581 = vmatprep.subr.mxu1 %v769_v10  ;;  %399 = vmatprep.subr.mxu0 %v769_v10  ;;  %v380_v12 = vld [vmem:[%s1059_s2 + $0x68] sm:$0xff]  ;;  %v770_v13 = vmov 0   ;;  %v379_v14 = vld [vmem:[%s1059_s2 + $0x60] sm:$0xff]  ;;  %v378_v15 = vld [vmem:[%s1059_s2 + $0x58] sm:$0xff]  ;;  %s191_s4 = scalar_lea.vmem %s1058_s1, %s570_s25  ;;  %vm210_vm0 = vcmask 203776   ;;  %vm231_vm1 = vcmask 408776  }
  0x16   : > { %v194_v2 = vld [vmem:[%s185_s28] sm:$0xff]  ;;  %v195_v3 = vld [vmem:[%s185_s28 + $0x8] sm:$0xff]  ;;  %606 = vmatpush1.msra.mxu1 %v382_v9  ;;  %400 = vmatpush1.msra.mxu0 %v382_v9  ;;  %v377_v16 = vld [vmem:[%s1059_s2 + $0x50] sm:$0xff]  ;;  %s774_s25 = smov 75   ;;  %vm252_vm2 = vcmask 613776   ;;  %vm317_vm3 = vcmask 179200  }
  0x17   : > { %235 = vperm.xlu1 %689, %v194_v2   ;;  %214 = vperm.xlu0 %688, %v194_v2   ;;  %v376_v17 = vld [vmem:[%s1059_s2 + $0x48] sm:$0xff]  ;;  %v375_v18 = vld [vmem:[%s1059_s2 + $0x40] sm:$0xff]  ;;  %v374_v19 = vld [vmem:[%s1059_s2 + $0x38] sm:$0xff]  ;;  %vm273_vm4 = vcmask 818776   ;;  %vm339_vm5 = vcmask 384176   ;;  %vm294_vm6 = vcmask 1023776  }
  0x18   : > { %582 = vmatprep.subr.mxu1 %v769_v10  ;;  %401 = vmatprep.subr.mxu0 %v769_v10  ;;  %v908_v20 = vld [vmem:[%s191_s4] sm:$0xff]  ;;  %v373_v21 = vld [vmem:[%s1059_s2 + $0x30] sm:$0xff]  ;;  %v372_v25 = vld [vmem:[%s1059_s2 + $0x28] sm:$0xff]  ;;  %vm315_vm7 = vcmask 1048552   ;;  %vm360_vm8 = vcmask 589176   ;;  %vm392_vm9 = vcmask 588800  }
  0x19   : > { %607 = vmatpush1.msra.mxu1 %v381_v11  ;;  %402 = vmatpush1.msra.mxu0 %v381_v11  ;;  %v921_v26 = vld [vmem:[%s191_s4 + $0x8] sm:$0xff]  ;;  %v371_v27 = vld [vmem:[%s1059_s2 + $0x20] sm:$0xff]  ;;  %v370_v30 = vld [vmem:[%s1059_s2 + $0x18] sm:$0xff]  ;;  %s704_s29 = sshll.u32 %s778_s16, 4  ;;  %s705_s29 = int_to_ptr.vmem [resolvable:$false] %s704_s29 }
  0x1a   : > { %583 = vmatprep.subr.mxu1 %v769_v10  ;;  %403 = vmatprep.subr.mxu0 %v769_v10  ;;  %v369_v33 = vld [vmem:[%s1059_s2 + $0x10] sm:$0xff]  ;;  %v368_v37 = vld [vmem:[%s1059_s2 + $0x8] sm:$0xff]  ;;  %v367_v39 = vld [vmem:[%s1059_s2] sm:$0xff]  ;;  %s706_s30 = scalar_lea.vmem %s705_s29, 512 }
  0x1b   : > { %239 = vperm.xlu1 %689, %v195_v3   ;;  %218 = vperm.xlu0 %688, %v195_v3   ;;  %v391_v43 = vld [vmem:[%s1059_s2 + $0xc0] sm:$0xff]  ;;  %v390_v46 = vld [vmem:[%s1059_s2 + $0xb8] sm:$0xff]  ;;  %v389_v49 = vld [vmem:[%s1059_s2 + $0xb0] sm:$0xff] }
  0x1c   : > { %608 = vmatpush1.msra.mxu1 %v380_v12  ;;  %404 = vmatpush1.msra.mxu0 %v380_v12  ;;  %v388_v51 = vld [vmem:[%s1059_s2 + $0xa8] sm:$0xff]  ;;  %v387_v55 = vld [vmem:[%s1059_s2 + $0xa0] sm:$0xff]  ;;  %v386_v56 = vld [vmem:[%s1059_s2 + $0x98] sm:$0xff] }
  0x1d   : > { %584 = vmatprep.subr.mxu1 %v769_v10  ;;  %405 = vmatprep.subr.mxu0 %v769_v10  ;;  %v385_v60 = vld [vmem:[%s1059_s2 + $0x90] sm:$0xff]  ;;  %v384_v62 = vld [vmem:[%s1059_s2 + $0x88] sm:$0xff]  ;;  %v383_v1 = vld [vmem:[%s1059_s2 + $0x80] sm:$0xff] }
  0x1e   : > { %609 = vmatpush1.msra.mxu1 %v379_v14  ;;  %406 = vmatpush1.msra.mxu0 %v379_v14 }
  0x1f   : > { %691 = vset.pattern.permute.xlu1 %v764_v4  ;;  %690 = vset.pattern.permute.xlu0 %v764_v4 }
  0x20   : > { %302 = vperm.xlu1 %691, %v195_v3   ;;  %298 = vperm.xlu0 %690, %v194_v2  }
  0x21   : > { %585 = vmatprep.subr.mxu1 %v769_v10  ;;  %407 = vmatprep.subr.mxu0 %v769_v10 }
  0x22   : > { %610 = vmatpush1.msra.mxu1 %v378_v15  ;;  %408 = vmatpush1.msra.mxu0 %v378_v15 }
  0x23   : > { %586 = vmatprep.subr.mxu1 %v769_v10  ;;  %409 = vmatprep.subr.mxu0 %v769_v10 }
  0x24   : > { %692 = vset.pattern.permute.xlu1 %v765_v5  ;;  %693 = vset.pattern.permute.xlu0 %v765_v5 }
  0x25   : > { %256 = vperm.xlu1 %692, %v194_v2   ;;  %260 = vperm.xlu0 %693, %v195_v3  }
  0x26   : > { %611 = vmatpush1.msra.mxu1 %v377_v16  ;;  %410 = vmatpush1.msra.mxu0 %v377_v16 }
  0x27   : > { %587 = vmatprep.subr.mxu1 %v769_v10  ;;  %411 = vmatprep.subr.mxu0 %v769_v10 }
  0x28   : > { %612 = vmatpush1.msra.mxu1 %v376_v17  ;;  %412 = vmatpush1.msra.mxu0 %v376_v17 }
  0x29   : > { %694 = vset.pattern.permute.xlu1 %v766_v6  ;;  %695 = vset.pattern.permute.xlu0 %v767_v7 }
  0x2a   : > { %322 = vperm.xlu1 %694, %v194_v2   ;;  %277 = vperm.xlu0 %695, %v194_v2  }
  0x2b   : > { %588 = vmatprep.subr.mxu1 %v769_v10  ;;  %413 = vmatprep.subr.mxu0 %v769_v10 }
  0x2c   : > { %613 = vmatpush1.msra.mxu1 %v375_v18  ;;  %414 = vmatpush1.msra.mxu0 %v375_v18 }
  0x2d   : > { %589 = vmatprep.subr.mxu1 %v769_v10  ;;  %415 = vmatprep.subr.mxu0 %v769_v10 }
  0x2e   : > { %326 = vperm.xlu1 %694, %v195_v3   ;;  %698 = vset.pattern.permute.xlu0 %v768_v8 }
  0x2f   : > { %347 = vperm.xlu0 %698, %v195_v3   ;;  %614 = vmatpush1.msra.mxu1 %v374_v19 }
  0x30   : > { %416 = vmatpush1.msra.mxu0 %v374_v19  ;;  %590 = vmatprep.subr.mxu1 %v769_v10 }
  0x31   : > { %417 = vmatprep.subr.mxu0 %v769_v10  ;;  %615 = vmatpush1.msra.mxu1 %v373_v21 }
  0x32   : > { %696 = vset.pattern.permute.xlu1 %v767_v7  ;;  %418 = vmatpush1.msra.mxu0 %v373_v21 }
  0x33   : > { %281 = vperm.xlu1 %696, %v195_v3   ;;  %591 = vmatprep.subr.mxu1 %v769_v10 }
  0x34   : > { %419 = vmatprep.subr.mxu0 %v769_v10  ;;  %616 = vmatpush1.msra.mxu1 %v372_v25 }
  0x35   : > { %420 = vmatpush1.msra.mxu0 %v372_v25  ;;  %592 = vmatprep.subr.mxu1 %v769_v10 }
  0x36   : > { %421 = vmatprep.subr.mxu0 %v769_v10  ;;  %617 = vmatpush1.msra.mxu1 %v371_v27 }
  0x37   : > { %697 = vset.pattern.permute.xlu1 %v768_v8  ;;  %422 = vmatpush1.msra.mxu0 %v371_v27 }
  0x38   : > { %343 = vperm.xlu1 %697, %v194_v2   ;;  %593 = vmatprep.subr.mxu1 %v769_v10 }
  0x39   : > { %423 = vmatprep.subr.mxu0 %v769_v10  ;;  %618 = vmatpush1.msra.mxu1 %v370_v30 }
  0x3a   : > { %424 = vmatpush1.msra.mxu0 %v370_v30  ;;  %594 = vmatprep.subr.mxu1 %v769_v10 }
  0x3b   : > { %425 = vmatprep.subr.mxu0 %v769_v10  ;;  %619 = vmatpush1.msra.mxu1 %v369_v33 }
  0x3c   : > { %699 = vset.pattern.permute.xlu1 %v770_v13  ;;  %426 = vmatpush1.msra.mxu0 %v369_v33 }
  0x3d   : > { %200 = vperm.xlu1 %699, %v194_v2   ;;  %595 = vmatprep.subr.mxu1 %v769_v10 }
  0x3e   : > { %427 = vmatprep.subr.mxu0 %v769_v10  ;;  %620 = vmatpush1.msra.mxu1 %v368_v37 }
  0x3f   : > { %428 = vmatpush1.msra.mxu0 %v368_v37  ;;  %596 = vmatprep.subr.mxu1 %v769_v10 }
  0x40   : > { %429 = vmatprep.subr.mxu0 %v769_v10  ;;  %621 = vmatpush1.msra.mxu1 %v367_v39 }
  0x41   : > { %205 = vperm.xlu1 %699, %v195_v3   ;;  %430 = vmatpush1.msra.mxu0 %v367_v39 }
  0x42   : > { %597 = vmatprep.subr.mxu1 %v769_v10  ;;  %445 = vmatprep.subr.mxu0 %v769_v10 }
  0x43   : > { %622 = vmatpush2.msra.mxu1 %v391_v43  ;;  %446 = vmatpush2.msra.mxu0 %v391_v43 }
  0x44   : > { %598 = vmatprep.subr.mxu1 %v769_v10  ;;  %447 = vmatprep.subr.mxu0 %v769_v10 }
  0x45   : > { %623 = vmatpush2.msra.mxu1 %v390_v46  ;;  %448 = vmatpush2.msra.mxu0 %v390_v46 }
  0x46   : > { %599 = vmatprep.subr.mxu1 %v769_v10  ;;  %449 = vmatprep.subr.mxu0 %v769_v10 }
  0x47   : > { %624 = vmatpush2.msra.mxu1 %v389_v49  ;;  %450 = vmatpush2.msra.mxu0 %v389_v49 }
  0x48   : > { %600 = vmatprep.subr.mxu1 %v769_v10  ;;  %451 = vmatprep.subr.mxu0 %v769_v10 }
  0x49   : > { %625 = vmatpush2.msra.mxu1 %v388_v51  ;;  %452 = vmatpush2.msra.mxu0 %v388_v51 }
  0x4a   : > { %601 = vmatprep.subr.mxu1 %v769_v10  ;;  %453 = vmatprep.subr.mxu0 %v769_v10 }
  0x4b   : > { %626 = vmatpush2.msra.mxu1 %v387_v55  ;;  %454 = vmatpush2.msra.mxu0 %v387_v55 }
  0x4c   : > { %602 = vmatprep.subr.mxu1 %v769_v10  ;;  %455 = vmatprep.subr.mxu0 %v769_v10 }
  0x4d   : > { %627 = vmatpush2.msra.mxu1 %v386_v56  ;;  %456 = vmatpush2.msra.mxu0 %v386_v56 }
  0x4e   : > { %603 = vmatprep.subr.mxu1 %v769_v10  ;;  %457 = vmatprep.subr.mxu0 %v769_v10 }
  0x4f   : > { %628 = vmatpush2.msra.mxu1 %v385_v60  ;;  %458 = vmatpush2.msra.mxu0 %v385_v60 }
  0x50   : > { %604 = vmatprep.subr.mxu1 %v769_v10  ;;  %459 = vmatprep.subr.mxu0 %v769_v10 }
  0x51   : > { %629 = vmatpush2.msra.mxu1 %v384_v62  ;;  %460 = vmatpush2.msra.mxu0 %v384_v62 }
  0x52   : > { %605 = vmatprep.subr.mxu1 %v769_v10  ;;  %461 = vmatprep.subr.mxu0 %v769_v10 }
  0x53   : > { %630 = vmatpush2.msra.mxu1 %v383_v1  ;;  %462 = vmatpush2.msra.mxu0 %v383_v1 }
  0x92   : > { %v236_v22 = vpop.permute.xlu1 %235  ;;  %v215_v23 = vpop.permute.xlu0 %214 }
  0x93   : > { %v221_v24 = vmul.f32 %v215_v23, %v908_v20  ;;  %v242_v31 = vmul.f32 %v236_v22, %v908_v20 }
  0x95   : > { %225 = vrot.lane.b32.xlu0 %v221_v24, %s771_s9 }
  0x96   : > { %v240_v28 = vpop.permute.xlu1 %239  ;;  %v219_v29 = vpop.permute.xlu0 %218 }
  0x97   : > { %v222_v32 = vmul.f32 %v219_v29, %v921_v26  ;;  %v243_v34 = vmul.f32 %v240_v28, %v921_v26 }
  0x99   : > { %246 = vrot.lane.b32.xlu0 %v242_v31, %s772_s27  ;;  %227 = vrot.lane.b32.xlu1 %v222_v32, %s771_s9  ;;  %s568_s9 = sshll.u32 %s178_s8, 4 }
  0x9a   : > { %s180_s10 = scalar_lea.vmem [#allocation3], %s568_s9 }
  0x9b   : > { %v303_v35 = vpop.permute.xlu1 %302  ;;  %v299_v36 = vpop.permute.xlu0 %298  ;;  %s490_s11 = sshll.u32 %s180_s10, 4  ;;  %s1010_s11 = int_to_ptr.vmem [resolvable:$true] %s490_s11 }
  0x9c   : > { %v305_v38 = vmul.f32 %v299_v36, %v908_v20  ;;  %v306_v40 = vmul.f32 %v303_v35, %v921_v26  ;;  %s700_s28 = scalar_lea.vmem %s1010_s11, 256  ;;  %p707_p0 = scmp.lt.s32.totalorder %s1010_s11, %s705_s29 }
  0x9d   : > { %248 = vrot.lane.b32.xlu1 %v243_v34, %s772_s27  ;;  %s776_s27 = smov 100   ;;  %p701_p11 = scmp.ne.s32.totalorder %s1010_s11, %s700_s28 }
  0x9e   : > { %309 = vrot.lane.b32.xlu0 %v305_v38, %s773_s5  ;;  %p708_p1 = scmp.lt.s32.totalorder %s706_s30, %s700_s28 }
  0x9f   : > { %p702_p12 = pnand %p701_p11, %p839_p5 }
  0xa0   : > { %v257_v41 = vpop.permute.xlu1 %256  ;;  %v261_v42 = vpop.permute.xlu0 %260  ;;  %p709_p2 = por %p708_p1, %p707_p0 }
  0xa1   : > { %v263_v44 = vmul.f32 %v257_v41, %v908_v20  ;;  %311 = vrot.lane.b32.xlu1 %v306_v40, %s773_s5  ;;  %v264_v45 = vmul.f32 %v261_v42, %v921_v26  ;;  %p703_p13 = pneg %p702_p12 }
  0xa3   : > { %267 = vrot.lane.b32.xlu0 %v263_v44, %s774_s25  ;;  %p710_p3 = pnand %p709_p2, %p703_p13 }
  0xa5   : > { %v323_v47 = vpop.permute.xlu1 %322  ;;  %269 = vrot.lane.b32.xlu1 %v264_v45, %s774_s25  ;;  %v278_v48 = vpop.permute.xlu0 %277 }
  0xa6   : > { %v329_v50 = vmul.f32 %v323_v47, %v908_v20  ;;  %v284_v52 = vmul.f32 %v278_v48, %v908_v20 }
  0xa8   : > { %333 = vrot.lane.b32.xlu0 %v329_v50, %s775_s19 }
  0xa9   : > { %v327_v53 = vpop.permute.xlu1 %326 }
  0xaa   : > { %v330_v54 = vmul.f32 %v327_v53, %v921_v26  ;;  %v348_v58 = vpop.permute.xlu0 %347 }
  0xab   : > { %v351_v61 = vmul.f32 %v348_v58, %v921_v26 }
  0xac   : > { %335 = vrot.lane.b32.xlu1 %v330_v54, %s775_s19  ;;  %288 = vrot.lane.b32.xlu0 %v284_v52, %s776_s27 }
  0xae   : > { %v282_v57 = vpop.permute.xlu1 %281 }
  0xaf   : > { %v285_v59 = vmul.f32 %v282_v57, %v921_v26 }
  0xb1   : > { %290 = vrot.lane.b32.xlu1 %v285_v59, %s776_s27  ;;  %s1017_s27 = scalar_lea.sflag [#allocation4], %s178_s8 }
  0xb3   : > { %v344_v63 = vpop.permute.xlu1 %343 }
  0xb4   : > { %v350_v0 = vmul.f32 %v344_v63, %v908_v20 }
  0xb5   : > { %356 = vrot.lane.b32.xlu1 %v351_v61, %s777_s7 }
  0xb6   : > { %354 = vrot.lane.b32.xlu0 %v350_v0, %s777_s7 }
  0xb8   : > { %v201_v2 = vpop.permute.xlu1 %200 }
  0xb9   : > { %v208_v3 = vmul.f32 %v201_v2, %v908_v20 }
  0xbb   : > { %211 = vst.msk [vmem:[#allocation2] sm:$0xff] %vm210_vm0, %v208_v3 }
  0xbc   : > { %v206_v4 = vpop.permute.xlu1 %205 }
  0xbd   : > { %v209_v5 = vmul.f32 %v206_v4, %v921_v26 }
  0xbf   : > { %212 = vst.msk [vmem:[#allocation2 + $0x10] sm:$0xff] %vm210_vm0, %v209_v5 }
 0x107   : > { %v226_v6 = vpop.permute.xlu0 %225 }
 0x108   : > { %232 = vst.msk [vmem:[#allocation2] sm:$0xff] %vm231_vm1, %v226_v6 }
 0x10b   : > { %v228_v7 = vpop.permute.xlu1 %227  ;;  %v247_v8 = vpop.permute.xlu0 %246 }
 0x10c   : > { %233 = vst.msk [vmem:[#allocation2 + $0x10] sm:$0xff] %vm231_vm1, %v228_v7 }
 0x10d   : > { %253 = vst.msk [vmem:[#allocation2] sm:$0xff] %vm252_vm2, %v247_v8 }
 0x10f   : > { %v249_v9 = vpop.permute.xlu1 %248 }
 0x110   : > { %254 = vst.msk [vmem:[#allocation2 + $0x10] sm:$0xff] %vm252_vm2, %v249_v9  ;;  %v310_v10 = vpop.permute.xlu0 %309 }
 0x111   : > { %318 = vst.msk [vmem:[#allocation2 + $0x8] sm:$0xff] %vm317_vm3, %v310_v10 }
 0x113   : > { %v312_v11 = vpop.permute.xlu1 %311 }
 0x114   : > { %320 = vst.msk [vmem:[#allocation2 + $0x18] sm:$0xff] %vm317_vm3, %v312_v11 }
 0x115   : > { %v268_v12 = vpop.permute.xlu0 %267 }
 0x116   : > { %274 = vst.msk [vmem:[#allocation2] sm:$0xff] %vm273_vm4, %v268_v12 }
 0x117   : > { %v270_v13 = vpop.permute.xlu1 %269 }
 0x118   : > { %275 = vst.msk [vmem:[#allocation2 + $0x10] sm:$0xff] %vm273_vm4, %v270_v13 }
 0x11a   : > { %v334_v14 = vpop.permute.xlu0 %333 }
 0x11b   : > { %340 = vst.msk [vmem:[#allocation2 + $0x8] sm:$0xff] %vm339_vm5, %v334_v14 }
 0x11e   : > { %v336_v15 = vpop.permute.xlu1 %335  ;;  %v289_v16 = vpop.permute.xlu0 %288 }
 0x11f   : > { %341 = vst.msk [vmem:[#allocation2 + $0x18] sm:$0xff] %vm339_vm5, %v336_v15 }
 0x120   : > { %295 = vst.msk [vmem:[#allocation2] sm:$0xff] %vm294_vm6, %v289_v16 }
 0x121   : > { %316 = vst.msk [vmem:[#allocation2] sm:$0xff] %vm315_vm7, %v310_v10 }
 0x123   : > { %v291_v17 = vpop.permute.xlu1 %290 }
 0x124   : > { %296 = vst.msk [vmem:[#allocation2 + $0x10] sm:$0xff] %vm294_vm6, %v291_v17 }
 0x125   : > { %319 = vst.msk [vmem:[#allocation2 + $0x10] sm:$0xff] %vm315_vm7, %v312_v11 }
 0x127   : > { %v357_v18 = vpop.permute.xlu1 %356 }
 0x128   : > { %362 = vst.msk [vmem:[#allocation2 + $0x18] sm:$0xff] %vm360_vm8, %v357_v18  ;;  %v355_v19 = vpop.permute.xlu0 %354  ;;  %v363_v23 = vld [vmem:[#allocation2] sm:$0xff] }
 0x129   : > { %361 = vst.msk [vmem:[#allocation2 + $0x8] sm:$0xff] %vm360_vm8, %v355_v19 }
 0x12c   : > { %v365_v22 = vld [vmem:[#allocation2 + $0x10] sm:$0xff] }
 0x12f   : > { %v366_v20 = vld [vmem:[#allocation2 + $0x18] sm:$0xff] }
 0x130   : > { %574 = vmatprep.mubr.msk.f32.mxu1 %vm392_vm9, %v366_v20  ;;  %v364_v21 = vld [vmem:[#allocation2 + $0x8] sm:$0xff] }
 0x131   : > { %573 = vmatprep.mubr.msk.f32.mxu0 %vm392_vm9, %v364_v21  ;;  %469 = vmatmul.mubr.f32.vlgmr.msra.gmra.mxu1 %v365_v22 }
 0x132   : > { %464 = vmatmul.mubr.f32.vlgmr.msra.gmra.mxu0 %v363_v23 }
 0x1f1   : > { %v470_v24 = vpop.f32.mrf.mxu1 }
 0x1f2   : > { %475 = vst [vmem:[%s180_s10 + $0x8] sm:$0xff] %v470_v24  ;;  %v465_v25 = vpop.f32.mrf.mxu0 }
 0x1f3   : > { %474 = vst [vmem:[%s180_s10] sm:$0xff] %v465_v25  ;;  %v472_v26 = vpop.f32.mrf.mxu1 }
 0x1f4   : > { %v467_v27 = vpop.f32.mrf.mxu0 }
 0x1f5   : > { %713 = shalt.err (!%p710_p3)
}
 0x1f6   : > { %s714_s4 = scalar_lea.hbm %s1015_s26, 256  ;;  %s718_s24 = scalar_lea.hbm %s1060_s3, 1280 }
 0x1f7   : > { %p715_p4 = scmp.ne.s32.totalorder %s1015_s26, %s714_s4  ;;  %p719_p9 = scmp.lt.s32.totalorder %s1015_s26, %s1060_s3 }
 0x1f8   : > { %p720_p10 = scmp.lt.s32.totalorder %s718_s24, %s714_s4 }
 0x1f9   : > { %p716_p7 = pnand %p715_p4, %p839_p5 }
 0x1fa   : > { %p721_p11 = por %p720_p10, %p719_p9 }
 0x1fb   : > { %p717_p8 = pneg %p716_p7 }
 0x1fd   : > { %p722_p12 = pnand %p721_p11, %p717_p8 }
 0x1ff   : > { %725 = shalt.err (!%p722_p12)
}
 0x200   : > { %s779_s8 = smov 128   ;;  %s780_s9 = smov 8  }
 0x201   : > { %631 = dma.vmem_to_hbm [thread:$0]  (%p839_p5), %s1010_s11, 256, %s1015_s26, %s1017_s27, %s779_s8, %s779_s8, %s780_s9  }
 0x202 PF: > { %p637_p13 = scmp.ge.s32.totalorder %s760_s15, 2  ;;  %s505_s10 = sand.u32 1, %s748_s12  }
 0x203   : > { %s506_s17 = scalar_lea.sflag [#allocation4], %s505_s10 }
 0x204   : > { %p634_p0 = pnand %p637_p13, %p843_p6 }
 0x206   : > { %p635_p1 = pneg %p634_p0 }
 0x208   : > { %743 = dma.done.wait (%p635_p1), %s506_s17, 256  }
 0x209   : > { %745 = vsyncadd (%p635_p1), %s506_s17, 4294967040  ;;  %p13_p2 = scmp.ge.s32.totalorder %s826_s18, 7   ;;  %s1063_s12 = smov %s752_s13 }
 0x20a   : > { %s1064_s13 = smov %s756_s14  ;;  %s1065_s14 = smov %s837_s21 }
 0x20b   : > { %s1066_s15 = smov %s826_s18  ;;  %15 = sbr.rel (!%p13_p2) target bundleno = 3 (0x3), region = 70 }
 0x210   :  { %511 = vsyncpa [#allocation4], 1 }
 0x211   :  { %513 = vsyncpa [#allocation4 + $0x1], 1 }

</bundles_post_ra>
